<compile_context>
chip_gen: v6e
topology: v6e:2x2x1
jax: 0.10.0
libtpu: 0.0.40
codegen_flags: <defaults>
</compile_context>

<pallas_src>
import jax
import jax.numpy as jnp
from jax.experimental import pallas as pl
from jax.experimental.pallas import tpu as pltpu

EPS = 1e-5


# ---------------------------------------------------------------------------
# wrapper-side weight prep: HWIO -> per-kh block-Toeplitz [W*Cin, W*Cout]
# ---------------------------------------------------------------------------
def _toeplitz_weights(w_hwio, W, dtype=jnp.bfloat16):
    """w_hwio: [3, 3, Cin, Cout] -> [3, W*Cin, W*Cout] bf16.

    T_kh[wi*Cin + ci, wo*Cout + co] = w[kh, kw, ci, co] with wi = wo + kw - 1;
    out-of-range horizontal taps are simply absent (implicit zero padding).
    """
    KH, KW, Cin, Cout = w_hwio.shape
    wt = jnp.zeros((KH, W, Cin, W, Cout), jnp.float32)
    for kw in range(KW):
        for wo in range(W):
            wi = wo + kw - (KW // 2)
            if 0 <= wi < W:
                wt = wt.at[:, wi, :, wo, :].set(w_hwio[:, kw, :, :])
    return wt.reshape(KH, W * Cin, W * Cout).astype(dtype)


# ---------------------------------------------------------------------------
# in-kernel helper: 3x3 conv of one image via 3 lane-dense MXU matmuls
# ---------------------------------------------------------------------------
def _conv_rows(xpad_ref, w_ref, H, WCout):
    """xpad_ref: [H+2, W*Cin] bf16 (rows 0 / H+1 zero), w_ref: [3, W*Cin, W*Cout]."""
    acc = jnp.zeros((H, WCout), jnp.float32)
    for kh in range(3):  # unrolled; kh taps are cheap sublane slices
        acc += jnp.dot(xpad_ref[kh:kh + H, :], w_ref[kh],
                       preferred_element_type=jnp.float32)
    return acc


# ---------------------------------------------------------------------------
# kernels (grid = (N,), one image per step, "parallel")
# ---------------------------------------------------------------------------
def _conv1_kernel(x_ref, w_ref, c_ref, s_ref, ss_ref, xpad_ref):
    """conv1 of one image + per-image BN1 partial row-sums (single pass)."""
    _, H, WCin = x_ref.shape
    WCout = c_ref.shape[2]
    zrow = jnp.zeros((1, WCin), xpad_ref.dtype)
    xpad_ref[0:1, :] = zrow                       # vertical halo only: 2 dense
    xpad_ref[H + 1:H + 2, :] = zrow               # row stores per image
    xpad_ref[1:H + 1, :] = x_ref[0]               # already bf16, no cast
    acc = _conv_rows(xpad_ref, w_ref, H, WCout)   # [H, W*Cout] f32
    c_ref[...] = acc.reshape(1, H, WCout).astype(c_ref.dtype)     # lane dense
    s_ref[...] = jnp.sum(acc, axis=0, keepdims=True).reshape(1, 1, WCout)
    ss_ref[...] = jnp.sum(acc * acc, axis=0, keepdims=True).reshape(1, 1, WCout)


def _bn_relu_conv2_kernel(c1_ref, sc_ref, sh_ref, w_ref,
                          c2_ref, s_ref, ss_ref, ypad_ref):
    """BN1 (folded scale/shift, f32) + ReLU + conv2 + BN2 partial row-sums."""
    _, H, WCout = c1_ref.shape
    y1 = c1_ref[0].astype(jnp.float32) * sc_ref[...] + sh_ref[...]
    y1 = jnp.maximum(y1, 0.0)                     # [H, W*Cout] f32
    zrow = jnp.zeros((1, WCout), ypad_ref.dtype)
    ypad_ref[0:1, :] = zrow
    ypad_ref[H + 1:H + 2, :] = zrow
    ypad_ref[1:H + 1, :] = y1.astype(ypad_ref.dtype)   # single cast to bf16
    acc = _conv_rows(ypad_ref, w_ref, H, WCout)
    c2_ref[...] = acc.reshape(1, H, WCout).astype(c2_ref.dtype)
    s_ref[...] = jnp.sum(acc, axis=0, keepdims=True).reshape(1, 1, WCout)
    ss_ref[...] = jnp.sum(acc * acc, axis=0, keepdims=True).reshape(1, 1, WCout)


# ---------------------------------------------------------------------------
# wrapper
# ---------------------------------------------------------------------------
def _bn_fold(s, ss, count, gamma, beta, W, Cout):
    """Global BN stats from lane-dense per-image row-sums, folded w/ gamma/beta."""
    tot = jnp.sum(s.reshape(-1, W, Cout), axis=(0, 1))         # [Cout]
    tot_sq = jnp.sum(ss.reshape(-1, W, Cout), axis=(0, 1))
    mean = tot / count
    var = tot_sq / count - mean * mean                         # biased (train)
    scale = gamma * jax.lax.rsqrt(var + EPS)
    shift = beta - mean * scale
    return scale, shift


def _expand_lanes(v, W):
    """[Cout] per-channel vector -> lane-dense [1, W*Cout] (lane = w*Cout+c)."""
    return jnp.tile(v[None, :], (1, W))


def _vmem_limit(block_bytes, scratch_bytes):
    """Double-buffered pipeline blocks + scratch + headroom, >= scoped default."""
    need = 2 * block_bytes + scratch_bytes + (4 << 20)
    return int(min(max(need, 32 << 20), 64 << 20))


def double_conv(x_nchw, w1, g1, b1, w2, g2, b2):
    """x_nchw: [N, Cin, H, W] (PyTorch layout). Returns [N, Cout, H, W]."""
    N, Cin, H, W = x_nchw.shape
    Cout = w1.shape[-1]
    WCin, WCout = W * Cin, W * Cout
    count = N * H * W

    # NHWC, bf16, lane-dense [N, H, W*Cin]
    x = jnp.transpose(x_nchw, (0, 2, 3, 1)).reshape(N, H, WCin).astype(jnp.bfloat16)
    w1t = _toeplitz_weights(w1, W)                # [3, W*Cin,  W*Cout] bf16
    w2t = _toeplitz_weights(w2, W)                # [3, W*Cout, W*Cout] bf16

    act_spec = pl.BlockSpec((1, H, WCout), lambda i: (i, 0, 0))
    stat_spec = pl.BlockSpec((1, 1, WCout), lambda i: (i, 0, 0))
    vec_spec = pl.BlockSpec((1, WCout), lambda i: (0, 0))
    stat_shape = jax.ShapeDtypeStruct((N, 1, WCout), jnp.float32)
    act_shape = jax.ShapeDtypeStruct((N, H, WCout), jnp.bfloat16)

    # pass 1: conv1 per image + BN1 partial sums
    p1_blocks = 2 * (H * WCin + 3 * WCin * WCout + H * WCout) + 2 * WCout * 4
    p1 = pltpu.CompilerParams(
        dimension_semantics=("parallel",),
        vmem_limit_bytes=_vmem_limit(p1_blocks, (H + 2) * max(WCin, 128) * 2))
    c1, s1, ss1 = pl.pallas_call(
        _conv1_kernel,
        grid=(N,),
        in_specs=[pl.BlockSpec((1, H, WCin), lambda i: (i, 0, 0)),
                  pl.BlockSpec((3, WCin, WCout), lambda i: (0, 0, 0))],
        out_specs=[act_spec, stat_spec, stat_spec],
        out_shape=[act_shape, stat_shape, stat_shape],
        scratch_shapes=[pltpu.VMEM((H + 2, WCin), jnp.bfloat16)],
        compiler_params=p1,
    )(x, w1t)

    sc1, sh1 = _bn_fold(s1, ss1, count, g1, b1, W, Cout)
    sc1e, sh1e = _expand_lanes(sc1, W), _expand_lanes(sh1, W)

    # pass 2: BN1 + ReLU + conv2 per image + BN2 partial sums
    p2_blocks = 2 * (H * WCout + 3 * WCout * WCout + H * WCout) + 4 * WCout * 4
    p2 = pltpu.CompilerParams(
        dimension_semantics=("parallel",),
        vmem_limit_bytes=_vmem_limit(p2_blocks, (H + 2) * max(WCout, 128) * 2))
    c2, s2, ss2 = pl.pallas_call(
        _bn_relu_conv2_kernel,
        grid=(N,),
        in_specs=[act_spec, vec_spec, vec_spec,
                  pl.BlockSpec((3, WCout, WCout), lambda i: (0, 0, 0))],
        out_specs=[act_spec, stat_spec, stat_spec],
        out_shape=[act_shape, stat_shape, stat_shape],
        scratch_shapes=[pltpu.VMEM((H + 2, WCout), jnp.bfloat16)],
        compiler_params=p2,
    )(c1, sc1e, sh1e, w2t)

    sc2, sh2 = _bn_fold(s2, ss2, count, g2, b2, W, Cout)

    # pass 3 (plain XLA, per review): BN2 + ReLU fused with the NCHW transpose.
    y = c2.astype(jnp.float32).reshape(N, H, W, Cout)
    y = jnp.maximum(y * sc2 + sh2, 0.0)
    return jnp.transpose(y, (0, 3, 1, 2)).astype(x_nchw.dtype)   # -> NCHW


# ---------------------------------------------------------------------------
# pure-JAX f32 reference of the PyTorch forward (training-mode BatchNorm)
# ---------------------------------------------------------------------------
def reference(x_nchw, w1, g1, b1, w2, g2, b2):
    x = jnp.transpose(x_nchw, (0, 2, 3, 1))

    def block(x, w, g, b):
        y = jax.lax.conv_general_dilated(
            x, w, window_strides=(1, 1), padding="SAME",
            dimension_numbers=("NHWC", "HWIO", "NHWC"))
        mean = jnp.mean(y, axis=(0, 1, 2))
        var = jnp.mean((y - mean) ** 2, axis=(0, 1, 2))
        y = (y - mean) / jnp.sqrt(var + EPS) * g + b
        return jnp.maximum(y, 0.0)

    y = block(x, w1, g1, b1)
    y = block(y, w2, g2, b2)
    return jnp.transpose(y, (0, 3, 1, 2))


if __name__ == "__main__":
    N, Cin, Cout, H, W = 2, 4, 8, 16, 16
    key = jax.random.PRNGKey(0)
    kx, kw1, kw2 = jax.random.split(key, 3)

    x = jax.random.normal(kx, (N, Cin, H, W), jnp.float32)
    # Conv2d(bias=False) weights in HWIO layout.
    w1 = jax.random.normal(kw1, (3, 3, Cin, Cout), jnp.float32) * 0.1
    w2 = jax.random.normal(kw2, (3, 3, Cout, Cout), jnp.float32) * 0.1
    # BatchNorm2d default init: gamma=1, beta=0.
    g1 = jnp.ones((Cout,), jnp.float32)
    b1 = jnp.zeros((Cout,), jnp.float32)
    g2 = jnp.ones((Cout,), jnp.float32)
    b2 = jnp.zeros((Cout,), jnp.float32)

    out = jax.block_until_ready(double_conv(x, w1, g1, b1, w2, g2, b2))
    ref = reference(x, w1, g1, b1, w2, g2, b2)

    assert out.shape == (N, Cout, H, W), out.shape
    # bf16 MXU inputs + bf16 HBM intermediates vs. a pure-f32 reference after
    # two conv+BN stages -> allow bf16-level error.
    max_err = float(jnp.max(jnp.abs(out - ref)))
    assert max_err < 1e-1, max_err

    print("KERNEL_OK")
</pallas_src>

<mosaic_0001>
module attributes {stable_mosaic.version = 11 : i64} {
  func.func @_conv1_kernel(%arg0: i32, %arg1: memref<1x16x64xbf16, #tpu.memory_space<vmem>>, %arg2: memref<3x64x128xbf16, #tpu.memory_space<vmem>>, %arg3: memref<1x16x128xbf16, #tpu.memory_space<vmem>>, %arg4: memref<1x1x128xf32, #tpu.memory_space<vmem>>, %arg5: memref<1x1x128xf32, #tpu.memory_space<vmem>>, %arg6: memref<18x64xbf16, #tpu.memory_space<vmem>>) attributes {dimension_semantics = [#tpu.dimension_semantics<parallel>], iteration_bounds = array<i64: 2>, scalar_prefetch = 0 : i64, scratch_operands = 1 : i64, tpu.core_type = #tpu.core_type<tc>, window_params = [{transform_indices = @transform_0, window_bounds = array<i64: 1, 16, 64>}, {pipeline_mode = #tpu.pipeline_mode<synchronous>, transform_indices = @transform_1, window_bounds = array<i64: 3, 64, 128>}, {transform_indices = @transform_2, window_bounds = array<i64: 1, 16, 128>}, {transform_indices = @transform_3, window_bounds = array<i64: 1, 1, 128>}, {transform_indices = @transform_4, window_bounds = array<i64: 1, 1, 128>}]} {
    %cst = arith.constant 0.000000e+00 : bf16
    %0 = vector.broadcast %cst : bf16 to vector<1x64xbf16>
    %c0 = arith.constant 0 : index
    %c0_0 = arith.constant 0 : index
    %1 = vector.load %arg6[%c0, %c0_0] : memref<18x64xbf16, #tpu.memory_space<vmem>>, vector<1x64xbf16>
    tpu.vector_store %arg6[%c0, %c0_0], %0 {strides = array<i32>} : memref<18x64xbf16, #tpu.memory_space<vmem>>, vector<1x64xbf16>,
    %c17 = arith.constant 17 : index
    %c0_1 = arith.constant 0 : index
    %2 = vector.load %arg6[%c17, %c0_1] : memref<18x64xbf16, #tpu.memory_space<vmem>>, vector<1x64xbf16>
    tpu.vector_store %arg6[%c17, %c0_1], %0 {strides = array<i32>} : memref<18x64xbf16, #tpu.memory_space<vmem>>, vector<1x64xbf16>,
    %c0_2 = arith.constant 0 : index
    %c0_3 = arith.constant 0 : index
    %c0_4 = arith.constant 0 : index
    %3 = vector.load %arg1[%c0_2, %c0_3, %c0_4] : memref<1x16x64xbf16, #tpu.memory_space<vmem>>, vector<1x16x64xbf16>
    %4 = vector.shape_cast %3 : vector<1x16x64xbf16> to vector<16x64xbf16>
    %c1 = arith.constant 1 : index
    %c0_5 = arith.constant 0 : index
    %5 = vector.load %arg6[%c1, %c0_5] : memref<18x64xbf16, #tpu.memory_space<vmem>>, vector<16x64xbf16>
    tpu.vector_store %arg6[%c1, %c0_5], %4 {strides = array<i32>} : memref<18x64xbf16, #tpu.memory_space<vmem>>, vector<16x64xbf16>,
    %cst_6 = arith.constant 0.000000e+00 : f32
    %6 = vector.broadcast %cst_6 : f32 to vector<16x128xf32>
    %c0_7 = arith.constant 0 : index
    %c0_8 = arith.constant 0 : index
    %7 = vector.load %arg6[%c0_7, %c0_8] : memref<18x64xbf16, #tpu.memory_space<vmem>>, vector<16x64xbf16>
    %c0_9 = arith.constant 0 : index
    %c0_10 = arith.constant 0 : index
    %c0_11 = arith.constant 0 : index
    %8 = vector.load %arg2[%c0_9, %c0_10, %c0_11] : memref<3x64x128xbf16, #tpu.memory_space<vmem>>, vector<1x64x128xbf16>
    %9 = vector.shape_cast %8 : vector<1x64x128xbf16> to vector<64x128xbf16>
    %cst_12 = arith.constant dense<0.000000e+00> : vector<16x128xf32>
    %10 = tpu.matmul %7, %9, %cst_12 {dimension_numbers = #tpu.dot_dimension_numbers<[1], [0], [0], [1], [0, 0, 1, 1], [], []>} : vector<16x64xbf16>, vector<64x128xbf16>, vector<16x128xf32> -> vector<16x128xf32>
    %11 = arith.addf %6, %10 : vector<16x128xf32>
    %c1_13 = arith.constant 1 : index
    %c0_14 = arith.constant 0 : index
    %12 = vector.load %arg6[%c1_13, %c0_14] : memref<18x64xbf16, #tpu.memory_space<vmem>>, vector<16x64xbf16>
    %c1_15 = arith.constant 1 : index
    %c0_16 = arith.constant 0 : index
    %c0_17 = arith.constant 0 : index
    %13 = vector.load %arg2[%c1_15, %c0_16, %c0_17] : memref<3x64x128xbf16, #tpu.memory_space<vmem>>, vector<1x64x128xbf16>
    %14 = vector.shape_cast %13 : vector<1x64x128xbf16> to vector<64x128xbf16>
    %cst_18 = arith.constant dense<0.000000e+00> : vector<16x128xf32>
    %15 = tpu.matmul %12, %14, %cst_18 {dimension_numbers = #tpu.dot_dimension_numbers<[1], [0], [0], [1], [0, 0, 1, 1], [], []>} : vector<16x64xbf16>, vector<64x128xbf16>, vector<16x128xf32> -> vector<16x128xf32>
    %16 = arith.addf %11, %15 : vector<16x128xf32>
    %c2 = arith.constant 2 : index
    %c0_19 = arith.constant 0 : index
    %17 = vector.load %arg6[%c2, %c0_19] : memref<18x64xbf16, #tpu.memory_space<vmem>>, vector<16x64xbf16>
    %c2_20 = arith.constant 2 : index
    %c0_21 = arith.constant 0 : index
    %c0_22 = arith.constant 0 : index
    %18 = vector.load %arg2[%c2_20, %c0_21, %c0_22] : memref<3x64x128xbf16, #tpu.memory_space<vmem>>, vector<1x64x128xbf16>
    %19 = vector.shape_cast %18 : vector<1x64x128xbf16> to vector<64x128xbf16>
    %cst_23 = arith.constant dense<0.000000e+00> : vector<16x128xf32>
    %20 = tpu.matmul %17, %19, %cst_23 {dimension_numbers = #tpu.dot_dimension_numbers<[1], [0], [0], [1], [0, 0, 1, 1], [], []>} : vector<16x64xbf16>, vector<64x128xbf16>, vector<16x128xf32> -> vector<16x128xf32>
    %21 = arith.addf %16, %20 : vector<16x128xf32>
    %22 = vector.shape_cast %21 : vector<16x128xf32> to vector<1x16x128xf32>
    %23 = arith.truncf %22 : vector<1x16x128xf32> to vector<1x16x128xbf16>
    %c0_24 = arith.constant 0 : index
    %c0_25 = arith.constant 0 : index
    %c0_26 = arith.constant 0 : index
    %24 = vector.load %arg3[%c0_24, %c0_25, %c0_26] : memref<1x16x128xbf16, #tpu.memory_space<vmem>>, vector<1x16x128xbf16>
    tpu.vector_store %arg3[%c0_24, %c0_25, %c0_26], %23 {strides = array<i32>} : memref<1x16x128xbf16, #tpu.memory_space<vmem>>, vector<1x16x128xbf16>,
    %cst_27 = arith.constant dense<0.000000e+00> : vector<128xf32>
    %25 = vector.multi_reduction <add>, %21, %cst_27 [0] : vector<16x128xf32> to vector<128xf32>
    %26 = vector.shape_cast %25 : vector<128xf32> to vector<1x128xf32>
    %27 = vector.shape_cast %26 : vector<1x128xf32> to vector<1x1x128xf32>
    %c0_28 = arith.constant 0 : index
    %c0_29 = arith.constant 0 : index
    %c0_30 = arith.constant 0 : index
    %28 = vector.load %arg4[%c0_28, %c0_29, %c0_30] : memref<1x1x128xf32, #tpu.memory_space<vmem>>, vector<1x1x128xf32>
    tpu.vector_store %arg4[%c0_28, %c0_29, %c0_30], %27 {strides = array<i32>} : memref<1x1x128xf32, #tpu.memory_space<vmem>>, vector<1x1x128xf32>,
    %29 = arith.mulf %21, %21 : vector<16x128xf32>
    %cst_31 = arith.constant dense<0.000000e+00> : vector<128xf32>
    %30 = vector.multi_reduction <add>, %29, %cst_31 [0] : vector<16x128xf32> to vector<128xf32>
    %31 = vector.shape_cast %30 : vector<128xf32> to vector<1x128xf32>
    %32 = vector.shape_cast %31 : vector<1x128xf32> to vector<1x1x128xf32>
    %c0_32 = arith.constant 0 : index
    %c0_33 = arith.constant 0 : index
    %c0_34 = arith.constant 0 : index
    %33 = vector.load %arg5[%c0_32, %c0_33, %c0_34] : memref<1x1x128xf32, #tpu.memory_space<vmem>>, vector<1x1x128xf32>
    tpu.vector_store %arg5[%c0_32, %c0_33, %c0_34], %32 {strides = array<i32>} : memref<1x1x128xf32, #tpu.memory_space<vmem>>, vector<1x1x128xf32>,
    return
  }
  func.func @transform_0(%arg0: i32) -> (i32, i32, i32) {
    %c0_i32 = arith.constant 0 : i32
    %c0_i32_0 = arith.constant 0 : i32
    %c0_i32_1 = arith.constant 0 : i32
    return %arg0, %c0_i32, %c0_i32_0 : i32, i32, i32
  }
  func.func @transform_1(%arg0: i32) -> (i32, i32, i32) {
    %c0_i32 = arith.constant 0 : i32
    %c0_i32_0 = arith.constant 0 : i32
    %c0_i32_1 = arith.constant 0 : i32
    %c0_i32_2 = arith.constant 0 : i32
    return %c0_i32, %c0_i32_0, %c0_i32_1 : i32, i32, i32
  }
  func.func @transform_2(%arg0: i32) -> (i32, i32, i32) {
    %c0_i32 = arith.constant 0 : i32
    %c0_i32_0 = arith.constant 0 : i32
    %c0_i32_1 = arith.constant 0 : i32
    return %arg0, %c0_i32, %c0_i32_0 : i32, i32, i32
  }
  func.func @transform_3(%arg0: i32) -> (i32, i32, i32) {
    %c0_i32 = arith.constant 0 : i32
    %c0_i32_0 = arith.constant 0 : i32
    %c0_i32_1 = arith.constant 0 : i32
    return %arg0, %c0_i32, %c0_i32_0 : i32, i32, i32
  }
  func.func @transform_4(%arg0: i32) -> (i32, i32, i32) {
    %c0_i32 = arith.constant 0 : i32
    %c0_i32_0 = arith.constant 0 : i32
    %c0_i32_1 = arith.constant 0 : i32
    return %arg0, %c0_i32, %c0_i32_0 : i32, i32, i32
  }
}

</mosaic_0001>

<bundles_post_ra>
// kernel: tpu_custom_call.1
= control target key start
LH: loop header
LB: loop body
LE: loop exit
PB: predicated region body
PF: predicated region fallthrough
CT: control target
= control target key end

     0   :  { %10 = vsyncpa [#allocation4], 0  ;;  %s1472_s0 = inlined_call_operand.hbm [shape: bf16[2,16,64], index: 0, kind: input, shape index: {}]   ;;  %s1473_s1 = inlined_call_operand.hbm [shape: bf16[3,64,128], index: 1, kind: input, shape index: {}]   ;;  %s1474_s2 = inlined_call_operand.hbm [shape: bf16[2,16,128], index: 2, kind: output, shape index: {0}]   ;;  %s1475_s3 = inlined_call_operand.hbm [shape: f32[2,1,128], index: 3, kind: output, shape index: {1}]   ;;  %s1476_s4 = inlined_call_operand.hbm [shape: f32[2,1,128], index: 4, kind: output, shape index: {2}]  }
   0x1   :  { %12 = vsyncpa [#allocation4 + $0x1], 0 }
   0x2   :  { %13 = vsyncpa [#allocation7], 0 }
   0x3   :  { %14 = vsyncpa [#allocation5], 0 }
   0x4   :  { %16 = vsyncpa [#allocation5 + $0x1], 0 }
   0x5   :  { %17 = vsyncpa [#allocation10], 0 }
   0x6   :  { %19 = vsyncpa [#allocation10 + $0x1], 0  ;;  %s1171_s15 = smov 0   ;;  %s1173_s16 = smov 0  }
   0x7   :  { %s1175_s17 = smov 0   ;;  %s1177_s18 = smov 0  }
   0x8 LB: > { %s1192_s19 = sadd.s32 4294967295, %s1133_s18   ;;  %s1478_s20 = sadd.s32 4294967294, %s1133_s18   ;;  %s1133_s18 = sphi %s1177_s18, %s1504_s18   ;;  %s1129_s17 = sphi %s1175_s17, %s1503_s17   ;;  %s1125_s16 = sphi %s1173_s16, %s1502_s16   ;;  %s1121_s15 = sphi %s1171_s15, %s1501_s15  }
   0x9   : > { %p45_p0 = scmp.ne.s32.totalorder %s1125_s16, %s1121_s15  ;;  %p1477_p1 = scmp.eq.s32.totalorder %s1192_s19, 0 }
   0xa   : > { %p96_p3 = scmp.eq.s32.totalorder %s1478_s20, 1  ;;  %p770_p5 = scmp.ge.s32.totalorder %s1133_s18, 1 }
   0xb   : > { %p1203_p4 = por %p1477_p1, %p45_p0  ;;  %p155_p7 = scmp.lt.s32.totalorder %s1133_s18, 3 }
   0xc   : > { %p1208_p6 = por %p96_p3, %p45_p0  ;;  %s1135_s24 = smov [#allocation6]  }
   0xd   : > { %s1482_s21 = scalar_select %p1203_p4, 1, 0 }
   0xe   : > { %s1483_s22 = scalar_select %p1208_p6, 1, 0 }
   0xf   : > { %p1213_p8 = pnand %p770_p5, %p155_p7  ;;  %s167_s25 = sshll.u32 %s1135_s24, 4  ;;  %s168_s25 = int_to_ptr.vmem [resolvable:$true] %s167_s25 }
  0x10   : > { %s1227_s27 = sadd.s32 1, %s1133_s18   ;;  %s32_s28 = sadd.s32 1, %s1129_s17 }
  0x11   : > { %s1484_s23 = scalar_select %p1213_p8, 1, 0 }
  0x12   : > { %p879_p9 = pneg %p1213_p8  ;;  %s29_s29 = ssub.s32 %s1133_s18, %s1227_s27 }
  0x13   : > { %s966_s30 = scalar_lea.vmem %s168_s25, 1536  ;;  %p974_p5 = scmp.lt.s32.totalorder %s168_s25, %s168_s25 }
  0x14   : > { %p1222_p11 = pnand %p879_p9, %p1477_p1  ;;  %p967_p13 = scmp.ne.s32.totalorder %s168_s25, %s966_s30 }
  0x15   : > { %p975_p7 = scmp.lt.s32.totalorder %s966_s30, %s966_s30 }
  0x16   : > { %p957_p12 = pneg %p1222_p11 }
  0x17   : > { %p976_p10 = por %p975_p7, %p974_p5 }
  0x18   : > { %p969_p0 = pnand %p967_p13, %p957_p12 }
  0x1a   : > { %p970_p3 = pneg %p969_p0 }
  0x1c   : > { %p977_p2 = pnand %p976_p10, %p970_p3 }
  0x1e   : > { %980 = shalt.err (!%p977_p2)
}
  0x1f   : > { %s1136_s5 = smov 64   ;;  %s1137_s6 = smov 4  }
  0x20   : > { %882 = dma.hbm_to_vmem [thread:$0]  (!%p1222_p11), %s1473_s1, 1536, %s168_s25, [#allocation7], %s1136_s5, %s1136_s5, %s1137_s6  }
  0x21   : > { %p30_p2 = scmp.eq.s32.totalorder %s29_s29, 0  ;;  %p39_p9 = scmp.ne.s32.totalorder %s1129_s17, %s1125_s16 }
  0x22   : > { %p40_p10 = scmp.eq.s32.totalorder %s1133_s18, 0  ;;  %p898_p12 = scmp.lt.s32.totalorder %s1133_s18, 2 }
  0x23   : > { %s1247_s9 = scalar_select %p30_p2, %s1129_s17, %s32_s28  }
  0x24   : > { %p41_p13 = por %p40_p10, %p39_p9  ;;  %p1486_p0 = scmp.eq.s32.totalorder %s1192_s19, 1 }
  0x25   : > { %s181_s11 = sand.u32 1, %s1129_s17   ;;  %s807_s12 = sshll.u32 %s1133_s18, 7 }
  0x26   : > { %p1251_p3 = por %p1486_p0, %p39_p9  ;;  %s773_s13 = sshll.u32 %s181_s11, 3 }
  0x27   : > { %s1260_s26 = scalar_lea.hbm %s1472_s0, %s807_s12  ;;  %s185_s25 = scalar_lea.vmem [#allocation3], %s773_s13 }
  0x28   : > { %s1487_s10 = scalar_select %p1251_p3, 1, 0 }
  0x29   : > { %s192_s28 = sshll.u32 %s185_s25, 4  ;;  %p1262_p11 = pnand %p898_p12, %p41_p13  ;;  %s1266_s28 = int_to_ptr.vmem [resolvable:$true] %s192_s28 }
  0x2a   : > { %s1268_s30 = scalar_lea.sflag [#allocation4], %s181_s11  ;;  %s981_s7 = scalar_lea.hbm %s1260_s26, 128 }
  0x2b   : > { %p982_p5 = scmp.ne.s32.totalorder %s1260_s26, %s981_s7  ;;  %p983_p7 = pneg %p1262_p11 }
  0x2c   : > { %s986_s13 = scalar_lea.hbm %s1472_s0, 256  ;;  %p987_p10 = scmp.lt.s32.totalorder %s1260_s26, %s1472_s0 }
  0x2d   : > { %p984_p2 = pnand %p983_p7, %p982_p5  ;;  %p988_p12 = scmp.lt.s32.totalorder %s986_s13, %s981_s7 }
  0x2f   : > { %p985_p9 = pneg %p984_p2  ;;  %p989_p13 = por %p988_p12, %p987_p10 }
  0x31   : > { %p990_p0 = pnand %p989_p13, %p985_p9 }
  0x33   : > { %993 = shalt.err (!%p990_p0)
}
  0x34   : > { %s994_s11 = scalar_lea.vmem %s1266_s28, 128  ;;  %s1138_s25 = smov [#allocation3]  }
  0x35   : > { %p995_p1 = scmp.ne.s32.totalorder %s1266_s28, %s994_s11  ;;  %s999_s20 = sshll.u32 %s1138_s25, 4  ;;  %s1000_s20 = int_to_ptr.vmem [resolvable:$false] %s999_s20 }
  0x36   : > { %s1001_s8 = scalar_lea.vmem %s1000_s20, 256  ;;  %p1002_p2 = scmp.lt.s32.totalorder %s1266_s28, %s1000_s20 }
  0x37   : > { %p997_p6 = pnand %p995_p1, %p983_p7  ;;  %p1003_p3 = scmp.lt.s32.totalorder %s1001_s8, %s994_s11 }
  0x39   : > { %p998_p5 = pneg %p997_p6  ;;  %p1004_p4 = por %p1003_p3, %p1002_p2 }
  0x3b   : > { %p1005_p8 = pnand %p1004_p4, %p998_p5 }
  0x3d   : > { %1008 = shalt.err (!%p1005_p8)
}
  0x3e   : > { %886 = dma.hbm_to_vmem [thread:$0]  (!%p1262_p11), %s1260_s26, 128, %s1266_s28, %s1268_s30, %s1136_s5, %s1136_s5, %s1137_s6  }
  0x3f   : > { %p1489_p1 = scmp.ne.s32.totalorder %s1484_s23, 0 }
  0x40   : > { %s1295_s7 = sand.u32 (!%p1489_p1), 1, %s1125_s16   ;;  %p1490_p4 = scmp.ne.s32.totalorder (!%p1489_p1), %s1482_s21, 0 }
  0x41   : > { %204 = sbr.rel (%p1489_p1) target bundleno = 384 (0x180), region = 28  ;;  %s777_s20 = sshll.u32 (!%p1489_p1), %s1295_s7, 3 }
  0x42   : > { %s207_s12 = scalar_lea.sflag (!%p1489_p1), [#allocation4], %s1295_s7  ;;  %s1301_s29 = scalar_lea.vmem (!%p1489_p1), [#allocation3], %s777_s20 }
  0x46   : > { %1104 = dma.done.wait (%p1490_p4), %s207_s12, 128  }
  0x47   : > { %1106 = vsyncadd (%p1490_p4), %s207_s12, 4294967168  ;;  %p1491_p6 = scmp.eq.s32.totalorder %s1192_s19, 0 }
  0x49   : > { %1108 = dma.done.wait (%p1491_p6), [#allocation7], 1536   ;;  %p1492_p8 = pmov %p1491_p6 }
  0x4a   : > { %v1139_v0 = vmov 0.0   ;;  %vm1140_vm0 = vmmov 0   ;;  %vm249_vm1 = vsmask.f32 256  ;;  %vm254_vm2 = vsmask.f32 7938 }
  0x4b   : > { %1110 = vsyncadd (%p1492_p8), [#allocation7], 4294965760  ;;  %831 = vmatprep.subr.bf16.mxu0 %v1139_v0  ;;  %843 = vmatprep.subr.bf16.mxu1 %v1139_v0  ;;  %v940_v1 = vld [vmem:[#allocation6 + $0x38] sm:$0xff]   ;;  %vm248_vm3 = vcmask 516096   ;;  %v942_v3 = vld [vmem:[#allocation6 + $0x30] sm:$0xff]   ;;  %vm283_vm7 = vcmask 519168  }
  0x4c   : > { %839 = vmatprep.mubr.msk.bf16.mxu0 %vm1140_vm0, %v1139_v0  ;;  %851 = vmatprep.mubr.msk.bf16.mxu1 %vm1140_vm0, %v1139_v0  ;;  %v941_v2 = vld [vmem:[#allocation6 + $0x18] sm:$0xff]   ;;  %v943_v4 = vld [vmem:[#allocation6 + $0x10] sm:$0xff]   ;;  %vm1320_vm4 = vmand %vm248_vm3, %vm249_vm1  ;;  %vm261_vm6 = vsmask.f32 4368  ;;  %vm358_vm10 = vcmask 523264   ;;  %vm483_vm12 = vcmask 1046528  }
  0x4d   : > { %832 = vmatpush3.bf16.msra.mxu0 %v940_v1  ;;  %844 = vmatpush3.bf16.msra.mxu1 %v941_v2  ;;  %vm1325_vm5 = vmand %vm248_vm3, %vm254_vm2  ;;  %v944_v7 = vld [vmem:[#allocation6 + $0x28] sm:$0xff]   ;;  %v946_v9 = vld [vmem:[#allocation6 + $0x20] sm:$0xff]   ;;  %vm321_vm11 = vsmask.f32 7424  ;;  %s810_s21 = sshll.u32 %s1192_s19, 7  ;;  %s234_s23 = scalar_lea.vmem [#allocation8], %s777_s20 }
  0x4e   : > { %833 = vmatprep.subr.bf16.mxu0 %v1139_v0  ;;  %845 = vmatprep.subr.bf16.mxu1 %v1139_v0  ;;  %v945_v8 = vld [vmem:[#allocation6 + $0x8] sm:$0xff]   ;;  %v251_v10 = vld [vmem:[#allocation2] sm:$0x1]  ;;  %v259_v12 = vld [vmem:[%s1301_s29] sm:$0xf]  ;;  %s607_s5 = sshll.u32 %s234_s23, 4  ;;  %s1359_s28 = scalar_lea.hbm %s1474_s2, %s810_s21  ;;  %s1361_s5 = int_to_ptr.vmem [resolvable:$true] %s607_s5 }
  0x4f   : > { %v256_v11 = vld [vmem:[#allocation2 + $0x8] sm:$0x1]  ;;  %v252_v13 = vsel %vm1320_vm4, 0, %v251_v10  ;;  %v260_v15 = vld [vmem:[%s1301_s29 + $0x4] sm:$0xf]  ;;  %v264_v16 = vshrl.u32 %v259_v12, 16  ;;  %vm262_vm8 = vmor %vm249_vm1, %vm261_vm6 }
  0x50   : > { %v257_v14 = vsel %vm1325_vm5, 0, %v256_v11  ;;  %v267_v17 = vshll.u32 %v259_v12, 16  ;;  %253 = vst [vmem:[#allocation2] sm:$0x1] %v252_v13  ;;  %v272_v18 = vshrl.u32 %v260_v15, 16  ;;  %v275_v19 = vshll.u32 %v260_v15, 16  ;;  %vm284_vm9 = vmand %vm283_vm7, %vm254_vm2 }
  0x51   : > { %834 = vmatpush3.bf16.msra.mxu0 %v942_v3  ;;  %846 = vmatpush3.bf16.msra.mxu1 %v943_v4  ;;  %258 = vst [vmem:[#allocation2 + $0x8] sm:$0x1] %v257_v14  ;;  %v947_v20 = vld [vmem:[#allocation6] sm:$0xff]   ;;  %v266_v21 = vrot.slane %v264_v16, 7  ;;  %v950_v42 = vld [vmem:[#allocation6 + $0x58] sm:$0xff]   ;;  %v951_v44 = vld [vmem:[#allocation6 + $0x50] sm:$0xff]  }
  0x52   : > { %835 = vmatprep.subr.bf16.mxu0 %v1139_v0  ;;  %847 = vmatprep.subr.bf16.mxu1 %v1139_v0  ;;  %v274_v22 = vrot.slane %v272_v18, 7  ;;  %v952_v46 = vld [vmem:[#allocation6 + $0x48] sm:$0xff]   ;;  %v953_v48 = vld [vmem:[#allocation6 + $0x40] sm:$0xff]   ;;  %s586_s30 = scalar_lea.sflag [#allocation5], %s1295_s7  ;;  %s1009_s13 = scalar_lea.vmem %s1361_s5, 128 }
  0x53   : > { %v270_v23 = vrot.slane %v266_v21, 4  ;;  %v269_v24 = vor.u32 %v267_v17, %v266_v21  ;;  %p1010_p3 = scmp.ne.s32.totalorder %s1361_s5, %s1009_s13  ;;  %p1497_p11 = scmp.ne.s32.totalorder %s1487_s10, 0 }
  0x54   : > { %v277_v25 = vor.u32 %v275_v19, %v274_v22  ;;  %v279_v26 = vrot.slane %v274_v22, 4  ;;  %s1141_s14 = smov [#allocation8]  }
  0x55   : > { %836 = vmatpush3.bf16.msra.mxu0 %v944_v7  ;;  %848 = vmatpush3.bf16.msra.mxu1 %v945_v8  ;;  %p1011_p7 = pnand %p1010_p3, %p1497_p11  ;;  %s1013_s24 = sshll.u32 %s1141_s14, 4  ;;  %s1014_s24 = int_to_ptr.vmem [resolvable:$false] %s1013_s24 }
  0x56   : > { %837 = vmatprep.subr.bf16.mxu0 %v1139_v0  ;;  %849 = vmatprep.subr.bf16.mxu1 %v1139_v0  ;;  %v278_v27 = vsel %vm262_vm8, %v270_v23, %v277_v25  ;;  %s1015_s11 = scalar_lea.vmem %s1014_s24, 256  ;;  %p1016_p10 = scmp.lt.s32.totalorder %s1361_s5, %s1014_s24 }
  0x57   : > { %v285_v28 = vld [vmem:[#allocation2] sm:$0xf]  ;;  %289 = vst.msk [vmem:[#allocation2 + $0x4] sm:$0xf] %vm283_vm7, %v278_v27  ;;  %p1012_p9 = pneg %p1011_p7  ;;  %p1017_p12 = scmp.lt.s32.totalorder %s1015_s11, %s1009_s13 }
  0x58   : > { %v290_v29 = vld [vmem:[#allocation2 + $0x8] sm:$0x1]  ;;  %v286_v30 = vsel %vm284_vm9, %v269_v24, %v285_v28 }
  0x59   : > { %838 = vmatpush3.bf16.msra.mxu0 %v946_v9  ;;  %850 = vmatpush3.bf16.msra.mxu1 %v947_v20  ;;  %v291_v31 = vsel %vm1320_vm4, %v279_v26, %v290_v29  ;;  %287 = vst [vmem:[#allocation2] sm:$0xf] %v286_v30  ;;  %p1018_p13 = por %p1017_p12, %p1016_p10 }
  0x5a   : > { %855 = vmatprep.subr.bf16.mxu0 %v1139_v0  ;;  %292 = vst [vmem:[#allocation2 + $0x8] sm:$0x1] %v291_v31 }
  0x5b   : > { %p1019_p0 = pnand %p1018_p13, %p1012_p9 }
  0x5e   : > { %v294_v32 = vld [vmem:[#allocation2 + $0x4] sm:$0xf] }
  0x60   : > { %v293_v33 = vld [vmem:[#allocation2] sm:$0xf] }
  0x61   : > { %v780_v34 = vcombine.low %v293_v33, %v294_v32  ;;  %v949_v35 = vld [vmem:[#allocation2 + $0x8] ss:$0 sps:$4 sm:$0x11]   ;;  %v470_v45 = vld [vmem:[#allocation2] sm:$0xe] }
  0x62   : > { %v330_v38 = vshll.u32 %v949_v35, 16  ;;  %v792_v47 = vcombine.low %v470_v45, %v294_v32  ;;  %v485_v50 = vrot.slane %v949_v35, 1 }
  0x63   : > { %v323_v36 = vshrl.u32 %v780_v34, 16  ;;  %v325_v37 = vshll.u32 %v780_v34, 16  ;;  %852 = vmatmul.mubr.msk.bf16.vlgmr.msra.gmra.mxu1 %vm358_vm10, %v780_v34 }
  0x64   : > { %v332_v40 = vrot.slane %v330_v38, 1  ;;  %v484_v49 = vrot.slane %v792_v47, 1 }
  0x65   : > { %v327_v39 = vrot.slane %v325_v37, 1 }
  0x66   : > { %v486_v51 = vsel %vm483_vm12, %v484_v49, %v485_v50 }
  0x67   : > { %v328_v41 = vor.u32 %v327_v39, %v323_v36 }
  0x69   : > { %v333_v43 = vsel %vm321_vm11, %v328_v41, %v332_v40 }
  0x6a   : > { %840 = vmatmul.mubr.msk.bf16.vlgmr.msra.gmra.mxu0 %vm358_vm10, %v333_v43 }
  0x6b   : > { %856 = vmatpush3.bf16.msra.mxu0 %v950_v42  ;;  %863 = vmatprep.mubr.msk.bf16.mxu0 %vm1140_vm0, %v1139_v0 }
  0x6c   : > { %857 = vmatprep.subr.bf16.mxu0 %v1139_v0 }
  0x6f   : > { %858 = vmatpush3.bf16.msra.mxu0 %v951_v44 }
  0x70   : > { %859 = vmatprep.subr.bf16.mxu0 %v1139_v0 }
  0x73   : > { %860 = vmatpush3.bf16.msra.mxu0 %v952_v46 }
  0x74   : > { %861 = vmatprep.subr.bf16.mxu0 %v1139_v0 }
  0x77   : > { %862 = vmatpush3.bf16.msra.mxu0 %v953_v48 }
  0x7a   : > { %864 = vmatmul.mubr.msk.bf16.vlgmr.msra.gmra.mxu0 %vm358_vm10, %v486_v51 }
 0x123   : > { %v463_v52 = vpop.f32.mrf.mxu1 }
 0x125   : > { %v853_v53 = vpop.f32.mrf.mxu1 }
 0x127   : > { %v466_v54 = vpop.f32.mrf.mxu1 }
 0x129   : > { %v854_v55 = vpop.f32.mrf.mxu1 }
 0x12a   : > { %v396_v56 = vpop.f32.mrf.mxu0 }
 0x12b   : > { %v464_v61 = vadd.f32 %v463_v52, %v396_v56 }
 0x12c   : > { %v841_v57 = vpop.f32.mrf.mxu0 }
 0x12e   : > { %v399_v58 = vpop.f32.mrf.mxu0 }
 0x12f   : > { %v467_v63 = vadd.f32 %v466_v54, %v399_v58 }
 0x130   : > { %v842_v59 = vpop.f32.mrf.mxu0 }
 0x13a   : > { %v548_v60 = vpop.f32.mrf.mxu0 }
 0x13b   : > { %v555_v0 = vadd.f32 %v548_v60, %v464_v61 }
 0x13c   : > { %v865_v62 = vpop.f32.mrf.mxu0 }
 0x13d   : > { %v575_v4 = vmul.f32 %v555_v0, %v555_v0 }
 0x13e   : > { %v551_v1 = vpop.f32.mrf.mxu0 }
 0x13f   : > { %v556_v2 = vadd.f32 %v551_v1, %v467_v63 }
 0x140   : > { %v866_v3 = vpop.f32.mrf.mxu0 }
 0x141   : > { %v814_v5 = vpack.c.bf16 %v556_v2, %v555_v0  ;;  %v567_v6 = vadd.f32 %v556_v2, %v555_v0  ;;  %v576_v7 = vmul.f32 %v556_v2, %v556_v2 }
 0x143   : > { %815 = vst [vmem:[%s234_s23] sm:$0xff] %v814_v5   ;;  %v568_v8 = vrot.slane %v567_v6, 4  ;;  %v577_v9 = vadd.f32 %v576_v7, %v575_v4 }
 0x144   : > { %1022 = shalt.err (!%p1019_p0)
}
 0x145   : > { %s1023_s25 = scalar_lea.hbm %s1359_s28, 128  ;;  %s1027_s12 = scalar_lea.hbm %s1474_s2, 256 }
 0x146   : > { %p1024_p5 = scmp.ne.s32.totalorder %s1359_s28, %s1023_s25  ;;  %p1028_p4 = scmp.lt.s32.totalorder %s1359_s28, %s1474_s2 }
 0x147   : > { %p1029_p6 = scmp.lt.s32.totalorder %s1027_s12, %s1023_s25 }
 0x148   : > { %p1025_p2 = pnand %p1024_p5, %p1497_p11 }
 0x149   : > { %p1030_p8 = por %p1029_p6, %p1028_p4 }
 0x14a   : > { %p1026_p1 = pneg %p1025_p2 }
 0x14c   : > { %p1031_p3 = pnand %p1030_p8, %p1026_p1 }
 0x14e   : > { %1034 = shalt.err (!%p1031_p3)
}
 0x14f   : > { %s1142_s23 = smov 64   ;;  %s1143_s6 = smov 4   ;;  %v569_v10 = vadd.f32 %v568_v8, %v567_v6  ;;  %v578_v11 = vrot.slane %v577_v9, 4 }
 0x150   : > { %873 = dma.vmem_to_hbm [thread:$0]  (%p1497_p11), %s1361_s5, 128, %s1359_s28, %s586_s30, %s1142_s23, %s1142_s23, %s1143_s6  }
 0x151   : > { %v570_v12 = vrot.slane %v569_v10, 2  ;;  %v579_v13 = vadd.f32 %v578_v11, %v577_v9  ;;  %s590_s26 = sand.u32 1, %s1192_s19   ;;  %s803_s13 = sshll.u32 %s1192_s19, 4 }
 0x152   : > { %s240_s14 = scalar_lea.vmem [#allocation9], %s1295_s7  ;;  %s246_s11 = scalar_lea.vmem [#allocation11], %s1295_s7 }
 0x153   : > { %v571_v14 = vadd.f32 %v570_v12, %v569_v10  ;;  %v580_v15 = vrot.slane %v579_v13, 2  ;;  %s623_s24 = sshll.u32 %s240_s14, 4  ;;  %s636_s25 = sshll.u32 %s246_s11, 4  ;;  %s1397_s24 = int_to_ptr.vmem [resolvable:$true] %s623_s24  ;;  %s1404_s25 = int_to_ptr.vmem [resolvable:$true] %s636_s25 }
 0x154   : > { %s1395_s28 = scalar_lea.hbm %s1475_s3, %s803_s13  ;;  %s1402_s20 = scalar_lea.hbm %s1476_s4, %s803_s13 }
 0x155   : > { %v572_v16 = vrot.slane %v571_v14, 1  ;;  %v581_v17 = vadd.f32 %v580_v15, %v579_v13  ;;  %s1406_s12 = scalar_lea.sflag [#allocation10], %s590_s26  ;;  %s1035_s29 = scalar_lea.vmem %s1397_s24, 16 }
 0x156   : > { %p1036_p7 = scmp.ne.s32.totalorder %s1397_s24, %s1035_s29  ;;  %s1144_s21 = smov [#allocation9]  }
 0x157   : > { %v582_v18 = vrot.slane %v581_v17, 1  ;;  %v573_v19 = vadd.f32 %v572_v16, %v571_v14  ;;  %s1039_s23 = sshll.u32 %s1144_s21, 4  ;;  %s1040_s23 = int_to_ptr.vmem [resolvable:$false] %s1039_s23 }
 0x158   : > { %p1037_p9 = pnand %p1036_p7, %p1497_p11  ;;  %s1041_s6 = scalar_lea.vmem %s1040_s23, 32 }
 0x159   : > { %574 = vst [vmem:[%s240_s14] sm:$0x1] %v573_v19  ;;  %v583_v20 = vadd.f32 %v582_v18, %v581_v17  ;;  %p1042_p12 = scmp.lt.s32.totalorder %s1397_s24, %s1040_s23  ;;  %p1043_p13 = scmp.lt.s32.totalorder %s1041_s6, %s1035_s29 }
 0x15a   : > { %p1038_p10 = pneg %p1037_p9 }
 0x15b   : > { %p1044_p0 = por %p1043_p13, %p1042_p12 }
 0x15d   : > { %p1045_p5 = pnand %p1044_p0, %p1038_p10 }
 0x15f   : > { %1048 = shalt.err (!%p1045_p5)
}
 0x160   : > { %s1049_s26 = scalar_lea.hbm %s1395_s28, 16  ;;  %s1053_s8 = scalar_lea.hbm %s1475_s3, 32 }
 0x161   : > { %p1050_p2 = scmp.ne.s32.totalorder %s1395_s28, %s1049_s26  ;;  %p1054_p6 = scmp.lt.s32.totalorder %s1395_s28, %s1475_s3 }
 0x162   : > { %p1055_p8 = scmp.lt.s32.totalorder %s1053_s8, %s1049_s26 }
 0x163   : > { %p1051_p1 = pnand %p1050_p2, %p1497_p11 }
 0x164   : > { %p1056_p3 = por %p1055_p8, %p1054_p6 }
 0x165   : > { %p1052_p4 = pneg %p1051_p1 }
 0x167   : > { %p1057_p7 = pnand %p1056_p3, %p1052_p4 }
 0x169   : > { %1060 = shalt.err (!%p1057_p7)
}
 0x16a   : > { %874 = dma.vmem_to_hbm [thread:$0]  (%p1497_p11), %s1397_s24, 16, %s1395_s28, %s1406_s12   ;;  %584 = vst [vmem:[%s246_s11] sm:$0x1] %v583_v20 }
 0x16b   : > { %s1061_s30 = scalar_lea.vmem %s1404_s25, 16  ;;  %s1145_s29 = smov [#allocation11]  }
 0x16c   : > { %p1062_p9 = scmp.ne.s32.totalorder %s1404_s25, %s1061_s30  ;;  %s1065_s21 = sshll.u32 %s1145_s29, 4  ;;  %s1066_s21 = int_to_ptr.vmem [resolvable:$false] %s1065_s21 }
 0x16d   : > { %s1067_s23 = scalar_lea.vmem %s1066_s21, 32  ;;  %p1068_p13 = scmp.lt.s32.totalorder %s1404_s25, %s1066_s21 }
 0x16e   : > { %p1063_p10 = pnand %p1062_p9, %p1497_p11  ;;  %p1069_p0 = scmp.lt.s32.totalorder %s1067_s23, %s1061_s30 }
 0x170   : > { %p1064_p12 = pneg %p1063_p10  ;;  %p1070_p5 = por %p1069_p0, %p1068_p13 }
 0x172   : > { %p1071_p2 = pnand %p1070_p5, %p1064_p12 }
 0x174   : > { %1074 = shalt.err (!%p1071_p2)
}
 0x175   : > { %s1075_s7 = scalar_lea.hbm %s1402_s20, 16  ;;  %s1079_s28 = scalar_lea.hbm %s1476_s4, 32 }
 0x176   : > { %p1076_p1 = scmp.ne.s32.totalorder %s1402_s20, %s1075_s7  ;;  %p1080_p8 = scmp.lt.s32.totalorder %s1402_s20, %s1476_s4 }
 0x177   : > { %p1081_p3 = scmp.lt.s32.totalorder %s1079_s28, %s1075_s7 }
 0x178   : > { %p1077_p4 = pnand %p1076_p1, %p1497_p11 }
 0x179   : > { %p1082_p7 = por %p1081_p3, %p1080_p8 }
 0x17a   : > { %p1078_p6 = pneg %p1077_p4 }
 0x17c   : > { %p1083_p9 = pnand %p1082_p7, %p1078_p6 }
 0x17e   : > { %1086 = shalt.err (!%p1083_p9)
}
 0x17f   : > { %875 = dma.vmem_to_hbm [thread:$0]  (%p1497_p11), %s1404_s25, 16, %s1402_s20, %s1406_s12  }
 0x180 PF: > { %s648_s13 = sand.u32 1, %s1121_s15   ;;  %p1498_p10 = scmp.ne.s32.totalorder %s1483_s22, 0 }
 0x181   : > { %p1499_p12 = scmp.ge.s32.totalorder %s1133_s18, 2  ;;  %s649_s14 = scalar_lea.sflag [#allocation5], %s648_s13 }
 0x183   : > { %p888_p13 = pnand %p1499_p12, %p1498_p10 }
 0x185   : > { %p889_p0 = pneg %p888_p13 }
 0x187   : > { %1112 = dma.done.wait (%p889_p0), %s649_s14, 128  }
 0x188   : > { %1114 = vsyncadd (%p889_p0), %s649_s14, 4294967168  ;;  %s1500_s8 = sadd.s32 4294967294, %s1133_s18  }
 0x189   : > { %s657_s5 = sand.u32 1, %s1500_s8  }
 0x18a   : > { %s658_s10 = scalar_lea.sflag [#allocation10], %s657_s5 }
 0x18b   : > { %1116 = dma.done.wait (%p889_p0), %s658_s10, 32  }
 0x18c   : > { %1118 = vsyncadd (%p889_p0), %s658_s10, 4294967264  ;;  %p22_p11 = scmp.ge.s32.totalorder %s1227_s27, 4   ;;  %s1501_s15 = smov %s1125_s16 }
 0x18d   : > { %s1502_s16 = smov %s1129_s17  ;;  %s1503_s17 = smov %s1247_s9 }
 0x18e   : > { %s1504_s18 = smov %s1227_s27  ;;  %24 = sbr.rel (!%p22_p11) target bundleno = 8 (0x8), region = 111 }
 0x193   :  { %670 = vsyncpa [#allocation4], 1 }
 0x194   :  { %672 = vsyncpa [#allocation4 + $0x1], 1 }
 0x195   :  { %673 = vsyncpa [#allocation7], 1 }
 0x196   :  { %674 = vsyncpa [#allocation5], 1 }
 0x197   :  { %676 = vsyncpa [#allocation5 + $0x1], 1 }
 0x198   :  { %677 = vsyncpa [#allocation10], 1 }
 0x199   :  { %679 = vsyncpa [#allocation10 + $0x1], 1 }

</bundles_post_ra>
